<compile_context>
chip_gen: v7x
topology: tpu7x:2x2x1
jax: 0.10.0
libtpu: 0.0.40
codegen_flags: <defaults>
</compile_context>

<pallas_src>
import functools

import jax
import jax.numpy as jnp
from jax import lax
from jax.experimental import pallas as pl
from jax.experimental.pallas import tpu as pltpu


INPUT_SIZE = 1
HIDDEN_SIZE = 16
NUM_LAYERS = 1  # single layer implemented (module default)

_FULL_UNROLL_MAX_T = 128  # fully unroll the recurrence for T up to this


# ----------------------------------------------------------------------------
# Pallas kernel: hoisted pre-gates + serial recurrence + VPU output head.
# ----------------------------------------------------------------------------
def _lstm_drift_kernel(scales_ref,   # SMEM (3,)          [s_ih, s_hh, s_fc]
                       x_ref,        # VMEM (T*B_pad, 1)  f32, time-major rows
                       w_ih_q_ref,   # VMEM (1, 4H)  int8 (cols permuted i,f,o,g)
                       w_hh_q_ref,   # VMEM (H, 4H)  int8 (cols permuted i,f,o,g)
                       b_ref,        # VMEM (1, 4H)  f32  (b_ih+b_hh, permuted,
                                     #                     i/f/o cols pre-halved)
                       w_fc_q_ref,   # VMEM (1, H)   int8
                       b_fc_ref,     # VMEM (1, 1)   f32
                       out_ref,      # VMEM (B_pad, 1) f32
                       pg_ref,       # VMEM scratch (T*B_pad, 4H) f32
                       *, full_unroll):
    H = w_hh_q_ref.shape[0]
    B_pad = out_ref.shape[0]
    TB = x_ref.shape[0]
    T = TB // B_pad

    # 0.5 column scale on the three sigmoid gates (i|f|o are the first 3H
    # columns after the prep-time permutation), 1.0 on the tanh gate g.
    # Folding a power-of-two into the dequant scale is numerically exact, so
    # gates[:, :3H] hold z/2 and sigmoid(z) == 0.5*tanh(z/2) + 0.5.
    col = lax.broadcasted_iota(jnp.int32, (1, 4 * H), 1)
    gate_scale = jnp.where(col < 3 * H, 0.5, 1.0).astype(jnp.float32)

    # Dequantize int8 weights once (per-tensor symmetric scales, i/f/o halved).
    w_ih = w_ih_q_ref[...].astype(jnp.float32) * (scales_ref[0] * gate_scale)
    w_hh_bf = (w_hh_q_ref[...].astype(jnp.float32)
               * (scales_ref[1] * gate_scale)).astype(jnp.bfloat16)   # (H,4H)
    w_fc = w_fc_q_ref[...].astype(jnp.float32) * scales_ref[2]        # (1, H)

    # Hoisted input projection + (pre-halved) bias for every timestep in one
    # parallel shot.  Row t*B_pad + b  <->  (time t, batch b).
    pg_ref[...] = x_ref[...] * w_ih + b_ref[...]                      # (T*B_pad,4H)

    def one_step(pre, h, c):
        # Single bf16 MXU pass; accumulate in f32.
        gates = pre + jnp.dot(h.astype(jnp.bfloat16), w_hh_bf,
                              preferred_element_type=jnp.float32)     # (B_pad,4H)
        t_all = jnp.tanh(gates)                 # one EUP launch over all gates
        sig = 0.5 * t_all[:, :3 * H] + 0.5      # [sigmoid(i) | f | o] via fma
        i_g = sig[:, 0 * H:1 * H]
        f_g = sig[:, 1 * H:2 * H]
        o_g = sig[:, 2 * H:3 * H]
        g_g = t_all[:, 3 * H:]                  # tanh gate (un-halved column)
        c_new = f_g * c + i_g * g_g
        h_new = o_g * jnp.tanh(c_new)           # second (and last) EUP launch
        return h_new, c_new

    h = jnp.zeros((B_pad, H), jnp.float32)
    c = jnp.zeros((B_pad, H), jnp.float32)

    if full_unroll:
        # Static full unroll: every slice index is static & sublane-aligned;
        # LLO scheduler sees all steps.
        for t in range(T):
            pre = pg_ref[t * B_pad:(t + 1) * B_pad, :]
            h, c = one_step(pre, h, c)
    else:
        def body(t, carry):
            h, c = carry
            row = pl.multiple_of(t * B_pad, B_pad)   # aligned dynamic sublane slice
            pre = pg_ref[pl.ds(row, B_pad), :]
            return one_step(pre, h, c)
        h, c = lax.fori_loop(0, T, body, (h, c), unroll=4)

    # Output head Linear(H, 1): VPU multiply + lane reduce (avoid N=1 MXU dot).
    out_ref[...] = jnp.sum(h * w_fc, axis=-1, keepdims=True) + b_fc_ref[...]


# ----------------------------------------------------------------------------
# Parameter prep (quantization happens here, ONCE — not on the forward path).
# ----------------------------------------------------------------------------
def _quantize_int8(w):
    """Symmetric per-tensor int8 fake-quant: returns (int8 weights, scale)."""
    # NOTE: clips to [-127, 127]; matches the in-script reference.
    scale = jnp.maximum(jnp.max(jnp.abs(w)) / 127.0, 1e-12)
    q = jnp.clip(jnp.round(w / scale), -127.0, 127.0).astype(jnp.int8)
    return q, scale.astype(jnp.float32)


def init_params(key, input_size=INPUT_SIZE, hidden_size=HIDDEN_SIZE):
    """Deterministic synthetic params matching PyTorch LSTM/Linear shapes."""
    ks = jax.random.split(key, 6)
    k = 1.0 / jnp.sqrt(hidden_size)
    u = lambda kk, shape: jax.random.uniform(kk, shape, jnp.float32, -k, k)
    # PyTorch shapes: weight_ih_l0 (4H, in), weight_hh_l0 (4H, H),
    # bias_ih_l0 (4H,), bias_hh_l0 (4H,), fc.weight (1, H), fc.bias (1,)
    w_ih = u(ks[0], (4 * hidden_size, input_size))
    w_hh = u(ks[1], (4 * hidden_size, hidden_size))
    b_ih = u(ks[2], (4 * hidden_size,))
    b_hh = u(ks[3], (4 * hidden_size,))
    w_fc = u(ks[4], (1, hidden_size))
    b_fc = u(ks[5], (1,))
    return dict(w_ih=w_ih, w_hh=w_hh, b_ih=b_ih, b_hh=b_hh,
                w_fc=w_fc, b_fc=b_fc)


def prepare_qparams(params, hidden_size=HIDDEN_SIZE):
    """Transpose, permute gate columns to [i, f, o, g], int8-quantize, and
    pre-halve the i/f/o bias entries (exact power-of-two scaling) for the
    sigmoid-via-tanh fold.

    Per-tensor symmetric quantization is invariant to transposition and column
    permutation, so the int8 values/scales are identical to quantizing the
    original PyTorch-ordered weights.
    """
    H = hidden_size
    perm = jnp.concatenate([
        jnp.arange(0, H),            # i
        jnp.arange(H, 2 * H),        # f
        jnp.arange(3 * H, 4 * H),    # o   (moved next to the other sigmoids)
        jnp.arange(2 * H, 3 * H),    # g   (tanh gate last)
    ])
    w_ih_t = params["w_ih"].T[:, perm]                      # (1, 4H)
    w_hh_t = params["w_hh"].T[:, perm]                      # (H, 4H)

    gate_half = jnp.concatenate([jnp.full((3 * H,), 0.5, jnp.float32),
                                 jnp.ones((H,), jnp.float32)])
    b = ((params["b_ih"] + params["b_hh"])[perm] * gate_half).reshape(1, 4 * H)
    w_fc_row = params["w_fc"].reshape(1, H)                 # (1, H) row layout

    w_ih_q, s_ih = _quantize_int8(w_ih_t)
    w_hh_q, s_hh = _quantize_int8(w_hh_t)
    w_fc_q, s_fc = _quantize_int8(w_fc_row)
    scales = jnp.stack([s_ih, s_hh, s_fc])                  # (3,)
    b_fc = params["b_fc"].reshape(1, 1)
    return dict(w_ih_q=w_ih_q, w_hh_q=w_hh_q, b=b,
                w_fc_q=w_fc_q, b_fc=b_fc, scales=scales)


# ----------------------------------------------------------------------------
# Forward wrapper.
# ----------------------------------------------------------------------------
def quantized_lstm_drift_compensator(x, qparams, *,
                                     unroll_threshold=_FULL_UNROLL_MAX_T):
    """Forward pass. x: (B, T, 1) float32 -> (B, 1) float32."""
    B, T, in_sz = x.shape
    assert in_sz == INPUT_SIZE
    H = HIDDEN_SIZE
    B_pad = max(8, ((B + 7) // 8) * 8)   # sublane-aligned batch

    # Time-major column layout: row t*B_pad + b  <->  (t, b).  Per-step reads
    # in the kernel are then aligned leading-(sublane)-axis slices only.
    x_tb = jnp.transpose(x.reshape(B, T)).astype(jnp.float32)       # (T, B)
    x_tb = jnp.pad(x_tb, ((0, 0), (0, B_pad - B)))                  # (T, B_pad)
    x_col = x_tb.reshape(T * B_pad, 1)

    vmem = pl.BlockSpec(memory_space=pltpu.MemorySpace.VMEM)
    smem = pl.BlockSpec(memory_space=pltpu.MemorySpace.SMEM)

    # pg scratch and width-1 x both lane-pad to 128; budget VMEM explicitly so
    # long sequences don't trip v5e's 16 MiB scoped default (bounded for v7x).
    vmem_need = 2 * (T * B_pad) * 128 * 4 + (8 << 20)
    vmem_limit = int(min(max(vmem_need, 32 << 20), 96 << 20))

    kernel = functools.partial(_lstm_drift_kernel,
                               full_unroll=(T <= unroll_threshold))

    out = pl.pallas_call(
        kernel,
        out_shape=jax.ShapeDtypeStruct((B_pad, 1), jnp.float32),
        in_specs=[smem, vmem, vmem, vmem, vmem, vmem, vmem],
        out_specs=vmem,
        scratch_shapes=[pltpu.VMEM((T * B_pad, 4 * H), jnp.float32)],
        compiler_params=pltpu.CompilerParams(vmem_limit_bytes=vmem_limit),
    )(qparams["scales"], x_col, qparams["w_ih_q"], qparams["w_hh_q"],
      qparams["b"], qparams["w_fc_q"], qparams["b_fc"])
    return out[:B]


# ----------------------------------------------------------------------------
# Pure-JAX reference with identical fake-quant semantics (PyTorch gate order).
# `matmul_dtype=bf16` mirrors the kernel's single-pass bf16 MXU recurrence.
# ----------------------------------------------------------------------------
def _reference_forward(x, params, *, matmul_dtype=jnp.float32):
    B, T, _ = x.shape
    H = HIDDEN_SIZE
    deq = lambda wt: (lambda q_s: q_s[0].astype(jnp.float32) * q_s[1])(
        _quantize_int8(wt))
    w_ih = deq(params["w_ih"].T)                           # (1, 4H)
    w_hh = deq(params["w_hh"].T)                           # (H, 4H)
    w_fc = deq(params["w_fc"].T)                           # (H, 1)
    b = (params["b_ih"] + params["b_hh"]).reshape(1, 4 * H)
    w_hh_m = w_hh.astype(matmul_dtype)
    h = jnp.zeros((B, H), jnp.float32)
    c = jnp.zeros((B, H), jnp.float32)
    for t in range(T):
        x_t = x[:, t, :]                                   # (B, 1)
        gates = (x_t @ w_ih + b
                 + jnp.dot(h.astype(matmul_dtype), w_hh_m,
                           preferred_element_type=jnp.float32))
        i_g = jax.nn.sigmoid(gates[:, 0 * H:1 * H])
        f_g = jax.nn.sigmoid(gates[:, 1 * H:2 * H])
        g_g = jnp.tanh(gates[:, 2 * H:3 * H])
        o_g = jax.nn.sigmoid(gates[:, 3 * H:4 * H])
        c = f_g * c + i_g * g_g
        h = o_g * jnp.tanh(c)
    return h @ w_fc + params["b_fc"].reshape(1, 1)


if __name__ == "__main__":
    key = jax.random.PRNGKey(0)
    k_param, k_x = jax.random.split(key)

    B, T = 2, 8
    params = init_params(k_param)
    qparams = prepare_qparams(params)          # quantize once, off the hot path
    x = jax.random.normal(k_x, (B, T, INPUT_SIZE), jnp.float32)

    # Fully-unrolled (default) path.
    y = jax.block_until_ready(quantized_lstm_drift_compensator(x, qparams))
    assert y.shape == (B, 1)

    # Tight check vs a reference that mirrors the kernel's bf16 MXU operands;
    # looser semantic check vs the pure-f32 reference (int8 weights + bf16
    # recurrence operands are within the quantized module's error budget).
    y_ref_bf16 = _reference_forward(x, params, matmul_dtype=jnp.bfloat16)
    y_ref_f32 = _reference_forward(x, params, matmul_dtype=jnp.float32)
    assert jnp.allclose(y, y_ref_bf16, rtol=2e-3, atol=2e-3), (y, y_ref_bf16)
    assert jnp.allclose(y, y_ref_f32, rtol=3e-2, atol=3e-2), (y, y_ref_f32)

    # Exercise the fori_loop (long-T) path on the same data.
    y_loop = jax.block_until_ready(
        quantized_lstm_drift_compensator(x, qparams, unroll_threshold=0))
    assert jnp.allclose(y_loop, y, rtol=1e-4, atol=1e-4), (y_loop, y)

    print("KERNEL_OK")
</pallas_src>

<mosaic_0001>
module attributes {stable_mosaic.version = 11 : i64} {
  func.func @_lstm_drift_kernel(%arg0: memref<3xf32, #tpu.memory_space<smem>>, %arg1: memref<64x1xf32, #tpu.memory_space<vmem>>, %arg2: memref<1x64xi8, #tpu.memory_space<vmem>>, %arg3: memref<16x64xi8, #tpu.memory_space<vmem>>, %arg4: memref<1x64xf32, #tpu.memory_space<vmem>>, %arg5: memref<1x16xi8, #tpu.memory_space<vmem>>, %arg6: memref<1x1xf32, #tpu.memory_space<vmem>>, %arg7: memref<8x1xf32, #tpu.memory_space<vmem>>, %arg8: memref<64x64xf32, #tpu.memory_space<vmem>>) attributes {dimension_semantics = [], scalar_prefetch = 0 : i64, scratch_operands = 1 : i64, tpu.core_type = #tpu.core_type<tc>} {
    %0 = tpu.iota {dimensions = array<i32: 1>} : vector<1x64xi32>
    %c48_i32 = arith.constant 48 : i32
    %1 = vector.broadcast %c48_i32 : i32 to vector<1x64xi32>
    %2 = arith.cmpi slt, %0, %1 : vector<1x64xi32>
    %cst = arith.constant 5.000000e-01 : f32
    %cst_0 = arith.constant 1.000000e+00 : f32
    %3 = vector.broadcast %cst : f32 to vector<1x64xf32>
    %4 = vector.broadcast %cst_0 : f32 to vector<1x64xf32>
    %5 = arith.select %2, %3, %4 : vector<1x64xi1>, vector<1x64xf32>
    %c0 = arith.constant 0 : index
    %c0_1 = arith.constant 0 : index
    %6 = vector.load %arg2[%c0, %c0_1] : memref<1x64xi8, #tpu.memory_space<vmem>>, vector<1x64xi8>
    %7 = arith.sitofp %6 : vector<1x64xi8> to vector<1x64xf32>
    %c0_2 = arith.constant 0 : index
    %8 = memref.load %arg0[%c0_2] : memref<3xf32, #tpu.memory_space<smem>>
    %9 = vector.broadcast %8 : f32 to vector<1x64xf32>
    %10 = arith.mulf %9, %5 : vector<1x64xf32>
    %11 = arith.mulf %7, %10 : vector<1x64xf32>
    %c0_3 = arith.constant 0 : index
    %c0_4 = arith.constant 0 : index
    %12 = vector.load %arg3[%c0_3, %c0_4] : memref<16x64xi8, #tpu.memory_space<vmem>>, vector<16x64xi8>
    %13 = arith.sitofp %12 : vector<16x64xi8> to vector<16x64xf32>
    %c1 = arith.constant 1 : index
    %14 = memref.load %arg0[%c1] : memref<3xf32, #tpu.memory_space<smem>>
    %15 = vector.broadcast %14 : f32 to vector<1x64xf32>
    %16 = arith.mulf %15, %5 : vector<1x64xf32>
    %17 = vector.broadcast %16 : vector<1x64xf32> to vector<16x64xf32>
    %18 = arith.mulf %13, %17 : vector<16x64xf32>
    %19 = arith.truncf %18 : vector<16x64xf32> to vector<16x64xbf16>
    %c0_5 = arith.constant 0 : index
    %c0_6 = arith.constant 0 : index
    %20 = vector.load %arg5[%c0_5, %c0_6] : memref<1x16xi8, #tpu.memory_space<vmem>>, vector<1x16xi8>
    %21 = arith.sitofp %20 : vector<1x16xi8> to vector<1x16xf32>
    %c2 = arith.constant 2 : index
    %22 = memref.load %arg0[%c2] : memref<3xf32, #tpu.memory_space<smem>>
    %23 = vector.broadcast %22 : f32 to vector<1x16xf32>
    %24 = arith.mulf %21, %23 : vector<1x16xf32>
    %c0_7 = arith.constant 0 : index
    %c0_8 = arith.constant 0 : index
    %25 = vector.load %arg1[%c0_7, %c0_8] : memref<64x1xf32, #tpu.memory_space<vmem>>, vector<64x1xf32>
    %26 = vector.broadcast %25 : vector<64x1xf32> to vector<64x64xf32>
    %27 = vector.broadcast %11 : vector<1x64xf32> to vector<64x64xf32>
    %28 = arith.mulf %26, %27 : vector<64x64xf32>
    %c0_9 = arith.constant 0 : index
    %c0_10 = arith.constant 0 : index
    %29 = vector.load %arg4[%c0_9, %c0_10] : memref<1x64xf32, #tpu.memory_space<vmem>>, vector<1x64xf32>
    %30 = vector.broadcast %29 : vector<1x64xf32> to vector<64x64xf32>
    %31 = arith.addf %28, %30 : vector<64x64xf32>
    %c0_11 = arith.constant 0 : index
    %c0_12 = arith.constant 0 : index
    %32 = vector.load %arg8[%c0_11, %c0_12] : memref<64x64xf32, #tpu.memory_space<vmem>>, vector<64x64xf32>
    tpu.vector_store %arg8[%c0_11, %c0_12], %31 {strides = array<i32>} : memref<64x64xf32, #tpu.memory_space<vmem>>, vector<64x64xf32>,
    %cst_13 = arith.constant 0.000000e+00 : f32
    %33 = vector.broadcast %cst_13 : f32 to vector<8x16xf32>
    %cst_14 = arith.constant 0.000000e+00 : f32
    %34 = vector.broadcast %cst_14 : f32 to vector<8x16xf32>
    %c0_15 = arith.constant 0 : index
    %c0_16 = arith.constant 0 : index
    %35 = vector.load %arg8[%c0_15, %c0_16] : memref<64x64xf32, #tpu.memory_space<vmem>>, vector<8x64xf32>
    %36 = arith.truncf %33 : vector<8x16xf32> to vector<8x16xbf16>
    %cst_17 = arith.constant dense<0.000000e+00> : vector<8x64xf32>
    %37 = tpu.matmul %36, %19, %cst_17 {dimension_numbers = #tpu.dot_dimension_numbers<[1], [0], [0], [1], [0, 0, 1, 1], [], []>} : vector<8x16xbf16>, vector<16x64xbf16>, vector<8x64xf32> -> vector<8x64xf32>
    %38 = arith.addf %35, %37 : vector<8x64xf32>
    %39 = math.tanh %38 : vector<8x64xf32>
    %40 = vector.extract_strided_slice %39 {offsets = [0, 0], sizes = [8, 48], strides = [1, 1]} : vector<8x64xf32> to vector<8x48xf32>
    %cst_18 = arith.constant 5.000000e-01 : f32
    %41 = vector.broadcast %cst_18 : f32 to vector<8x48xf32>
    %42 = arith.mulf %41, %40 : vector<8x48xf32>
    %cst_19 = arith.constant 5.000000e-01 : f32
    %43 = vector.broadcast %cst_19 : f32 to vector<8x48xf32>
    %44 = arith.addf %42, %43 : vector<8x48xf32>
    %45 = vector.extract_strided_slice %44 {offsets = [0, 0], sizes = [8, 16], strides = [1, 1]} : vector<8x48xf32> to vector<8x16xf32>
    %46 = vector.extract_strided_slice %44 {offsets = [0, 16], sizes = [8, 16], strides = [1, 1]} : vector<8x48xf32> to vector<8x16xf32>
    %47 = vector.extract_strided_slice %44 {offsets = [0, 32], sizes = [8, 16], strides = [1, 1]} : vector<8x48xf32> to vector<8x16xf32>
    %48 = vector.extract_strided_slice %39 {offsets = [0, 48], sizes = [8, 16], strides = [1, 1]} : vector<8x64xf32> to vector<8x16xf32>
    %49 = arith.mulf %46, %34 : vector<8x16xf32>
    %50 = arith.mulf %45, %48 : vector<8x16xf32>
    %51 = arith.addf %49, %50 : vector<8x16xf32>
    %52 = math.tanh %51 : vector<8x16xf32>
    %53 = arith.mulf %47, %52 : vector<8x16xf32>
    %c8 = arith.constant 8 : index
    %c0_20 = arith.constant 0 : index
    %54 = vector.load %arg8[%c8, %c0_20] : memref<64x64xf32, #tpu.memory_space<vmem>>, vector<8x64xf32>
    %55 = arith.truncf %53 : vector<8x16xf32> to vector<8x16xbf16>
    %cst_21 = arith.constant dense<0.000000e+00> : vector<8x64xf32>
    %56 = tpu.matmul %55, %19, %cst_21 {dimension_numbers = #tpu.dot_dimension_numbers<[1], [0], [0], [1], [0, 0, 1, 1], [], []>} : vector<8x16xbf16>, vector<16x64xbf16>, vector<8x64xf32> -> vector<8x64xf32>
    %57 = arith.addf %54, %56 : vector<8x64xf32>
    %58 = math.tanh %57 : vector<8x64xf32>
    %59 = vector.extract_strided_slice %58 {offsets = [0, 0], sizes = [8, 48], strides = [1, 1]} : vector<8x64xf32> to vector<8x48xf32>
    %cst_22 = arith.constant 5.000000e-01 : f32
    %60 = vector.broadcast %cst_22 : f32 to vector<8x48xf32>
    %61 = arith.mulf %60, %59 : vector<8x48xf32>
    %cst_23 = arith.constant 5.000000e-01 : f32
    %62 = vector.broadcast %cst_23 : f32 to vector<8x48xf32>
    %63 = arith.addf %61, %62 : vector<8x48xf32>
    %64 = vector.extract_strided_slice %63 {offsets = [0, 0], sizes = [8, 16], strides = [1, 1]} : vector<8x48xf32> to vector<8x16xf32>
    %65 = vector.extract_strided_slice %63 {offsets = [0, 16], sizes = [8, 16], strides = [1, 1]} : vector<8x48xf32> to vector<8x16xf32>
    %66 = vector.extract_strided_slice %63 {offsets = [0, 32], sizes = [8, 16], strides = [1, 1]} : vector<8x48xf32> to vector<8x16xf32>
    %67 = vector.extract_strided_slice %58 {offsets = [0, 48], sizes = [8, 16], strides = [1, 1]} : vector<8x64xf32> to vector<8x16xf32>
    %68 = arith.mulf %65, %51 : vector<8x16xf32>
    %69 = arith.mulf %64, %67 : vector<8x16xf32>
    %70 = arith.addf %68, %69 : vector<8x16xf32>
    %71 = math.tanh %70 : vector<8x16xf32>
    %72 = arith.mulf %66, %71 : vector<8x16xf32>
    %c16 = arith.constant 16 : index
    %c0_24 = arith.constant 0 : index
    %73 = vector.load %arg8[%c16, %c0_24] : memref<64x64xf32, #tpu.memory_space<vmem>>, vector<8x64xf32>
    %74 = arith.truncf %72 : vector<8x16xf32> to vector<8x16xbf16>
    %cst_25 = arith.constant dense<0.000000e+00> : vector<8x64xf32>
    %75 = tpu.matmul %74, %19, %cst_25 {dimension_numbers = #tpu.dot_dimension_numbers<[1], [0], [0], [1], [0, 0, 1, 1], [], []>} : vector<8x16xbf16>, vector<16x64xbf16>, vector<8x64xf32> -> vector<8x64xf32>
    %76 = arith.addf %73, %75 : vector<8x64xf32>
    %77 = math.tanh %76 : vector<8x64xf32>
    %78 = vector.extract_strided_slice %77 {offsets = [0, 0], sizes = [8, 48], strides = [1, 1]} : vector<8x64xf32> to vector<8x48xf32>
    %cst_26 = arith.constant 5.000000e-01 : f32
    %79 = vector.broadcast %cst_26 : f32 to vector<8x48xf32>
    %80 = arith.mulf %79, %78 : vector<8x48xf32>
    %cst_27 = arith.constant 5.000000e-01 : f32
    %81 = vector.broadcast %cst_27 : f32 to vector<8x48xf32>
    %82 = arith.addf %80, %81 : vector<8x48xf32>
    %83 = vector.extract_strided_slice %82 {offsets = [0, 0], sizes = [8, 16], strides = [1, 1]} : vector<8x48xf32> to vector<8x16xf32>
    %84 = vector.extract_strided_slice %82 {offsets = [0, 16], sizes = [8, 16], strides = [1, 1]} : vector<8x48xf32> to vector<8x16xf32>
    %85 = vector.extract_strided_slice %82 {offsets = [0, 32], sizes = [8, 16], strides = [1, 1]} : vector<8x48xf32> to vector<8x16xf32>
    %86 = vector.extract_strided_slice %77 {offsets = [0, 48], sizes = [8, 16], strides = [1, 1]} : vector<8x64xf32> to vector<8x16xf32>
    %87 = arith.mulf %84, %70 : vector<8x16xf32>
    %88 = arith.mulf %83, %86 : vector<8x16xf32>
    %89 = arith.addf %87, %88 : vector<8x16xf32>
    %90 = math.tanh %89 : vector<8x16xf32>
    %91 = arith.mulf %85, %90 : vector<8x16xf32>
    %c24 = arith.constant 24 : index
    %c0_28 = arith.constant 0 : index
    %92 = vector.load %arg8[%c24, %c0_28] : memref<64x64xf32, #tpu.memory_space<vmem>>, vector<8x64xf32>
    %93 = arith.truncf %91 : vector<8x16xf32> to vector<8x16xbf16>
    %cst_29 = arith.constant dense<0.000000e+00> : vector<8x64xf32>
    %94 = tpu.matmul %93, %19, %cst_29 {dimension_numbers = #tpu.dot_dimension_numbers<[1], [0], [0], [1], [0, 0, 1, 1], [], []>} : vector<8x16xbf16>, vector<16x64xbf16>, vector<8x64xf32> -> vector<8x64xf32>
    %95 = arith.addf %92, %94 : vector<8x64xf32>
    %96 = math.tanh %95 : vector<8x64xf32>
    %97 = vector.extract_strided_slice %96 {offsets = [0, 0], sizes = [8, 48], strides = [1, 1]} : vector<8x64xf32> to vector<8x48xf32>
    %cst_30 = arith.constant 5.000000e-01 : f32
    %98 = vector.broadcast %cst_30 : f32 to vector<8x48xf32>
    %99 = arith.mulf %98, %97 : vector<8x48xf32>
    %cst_31 = arith.constant 5.000000e-01 : f32
    %100 = vector.broadcast %cst_31 : f32 to vector<8x48xf32>
    %101 = arith.addf %99, %100 : vector<8x48xf32>
    %102 = vector.extract_strided_slice %101 {offsets = [0, 0], sizes = [8, 16], strides = [1, 1]} : vector<8x48xf32> to vector<8x16xf32>
    %103 = vector.extract_strided_slice %101 {offsets = [0, 16], sizes = [8, 16], strides = [1, 1]} : vector<8x48xf32> to vector<8x16xf32>
    %104 = vector.extract_strided_slice %101 {offsets = [0, 32], sizes = [8, 16], strides = [1, 1]} : vector<8x48xf32> to vector<8x16xf32>
    %105 = vector.extract_strided_slice %96 {offsets = [0, 48], sizes = [8, 16], strides = [1, 1]} : vector<8x64xf32> to vector<8x16xf32>
    %106 = arith.mulf %103, %89 : vector<8x16xf32>
    %107 = arith.mulf %102, %105 : vector<8x16xf32>
    %108 = arith.addf %106, %107 : vector<8x16xf32>
    %109 = math.tanh %108 : vector<8x16xf32>
    %110 = arith.mulf %104, %109 : vector<8x16xf32>
    %c32 = arith.constant 32 : index
    %c0_32 = arith.constant 0 : index
    %111 = vector.load %arg8[%c32, %c0_32] : memref<64x64xf32, #tpu.memory_space<vmem>>, vector<8x64xf32>
    %112 = arith.truncf %110 : vector<8x16xf32> to vector<8x16xbf16>
    %cst_33 = arith.constant dense<0.000000e+00> : vector<8x64xf32>
    %113 = tpu.matmul %112, %19, %cst_33 {dimension_numbers = #tpu.dot_dimension_numbers<[1], [0], [0], [1], [0, 0, 1, 1], [], []>} : vector<8x16xbf16>, vector<16x64xbf16>, vector<8x64xf32> -> vector<8x64xf32>
    %114 = arith.addf %111, %113 : vector<8x64xf32>
    %115 = math.tanh %114 : vector<8x64xf32>
    %116 = vector.extract_strided_slice %115 {offsets = [0, 0], sizes = [8, 48], strides = [1, 1]} : vector<8x64xf32> to vector<8x48xf32>
    %cst_34 = arith.constant 5.000000e-01 : f32
    %117 = vector.broadcast %cst_34 : f32 to vector<8x48xf32>
    %118 = arith.mulf %117, %116 : vector<8x48xf32>
    %cst_35 = arith.constant 5.000000e-01 : f32
    %119 = vector.broadcast %cst_35 : f32 to vector<8x48xf32>
    %120 = arith.addf %118, %119 : vector<8x48xf32>
    %121 = vector.extract_strided_slice %120 {offsets = [0, 0], sizes = [8, 16], strides = [1, 1]} : vector<8x48xf32> to vector<8x16xf32>
    %122 = vector.extract_strided_slice %120 {offsets = [0, 16], sizes = [8, 16], strides = [1, 1]} : vector<8x48xf32> to vector<8x16xf32>
    %123 = vector.extract_strided_slice %120 {offsets = [0, 32], sizes = [8, 16], strides = [1, 1]} : vector<8x48xf32> to vector<8x16xf32>
    %124 = vector.extract_strided_slice %115 {offsets = [0, 48], sizes = [8, 16], strides = [1, 1]} : vector<8x64xf32> to vector<8x16xf32>
    %125 = arith.mulf %122, %108 : vector<8x16xf32>
    %126 = arith.mulf %121, %124 : vector<8x16xf32>
    %127 = arith.addf %125, %126 : vector<8x16xf32>
    %128 = math.tanh %127 : vector<8x16xf32>
    %129 = arith.mulf %123, %128 : vector<8x16xf32>
    %c40 = arith.constant 40 : index
    %c0_36 = arith.constant 0 : index
    %130 = vector.load %arg8[%c40, %c0_36] : memref<64x64xf32, #tpu.memory_space<vmem>>, vector<8x64xf32>
    %131 = arith.truncf %129 : vector<8x16xf32> to vector<8x16xbf16>
    %cst_37 = arith.constant dense<0.000000e+00> : vector<8x64xf32>
    %132 = tpu.matmul %131, %19, %cst_37 {dimension_numbers = #tpu.dot_dimension_numbers<[1], [0], [0], [1], [0, 0, 1, 1], [], []>} : vector<8x16xbf16>, vector<16x64xbf16>, vector<8x64xf32> -> vector<8x64xf32>
    %133 = arith.addf %130, %132 : vector<8x64xf32>
    %134 = math.tanh %133 : vector<8x64xf32>
    %135 = vector.extract_strided_slice %134 {offsets = [0, 0], sizes = [8, 48], strides = [1, 1]} : vector<8x64xf32> to vector<8x48xf32>
    %cst_38 = arith.constant 5.000000e-01 : f32
    %136 = vector.broadcast %cst_38 : f32 to vector<8x48xf32>
    %137 = arith.mulf %136, %135 : vector<8x48xf32>
    %cst_39 = arith.constant 5.000000e-01 : f32
    %138 = vector.broadcast %cst_39 : f32 to vector<8x48xf32>
    %139 = arith.addf %137, %138 : vector<8x48xf32>
    %140 = vector.extract_strided_slice %139 {offsets = [0, 0], sizes = [8, 16], strides = [1, 1]} : vector<8x48xf32> to vector<8x16xf32>
    %141 = vector.extract_strided_slice %139 {offsets = [0, 16], sizes = [8, 16], strides = [1, 1]} : vector<8x48xf32> to vector<8x16xf32>
    %142 = vector.extract_strided_slice %139 {offsets = [0, 32], sizes = [8, 16], strides = [1, 1]} : vector<8x48xf32> to vector<8x16xf32>
    %143 = vector.extract_strided_slice %134 {offsets = [0, 48], sizes = [8, 16], strides = [1, 1]} : vector<8x64xf32> to vector<8x16xf32>
    %144 = arith.mulf %141, %127 : vector<8x16xf32>
    %145 = arith.mulf %140, %143 : vector<8x16xf32>
    %146 = arith.addf %144, %145 : vector<8x16xf32>
    %147 = math.tanh %146 : vector<8x16xf32>
    %148 = arith.mulf %142, %147 : vector<8x16xf32>
    %c48 = arith.constant 48 : index
    %c0_40 = arith.constant 0 : index
    %149 = vector.load %arg8[%c48, %c0_40] : memref<64x64xf32, #tpu.memory_space<vmem>>, vector<8x64xf32>
    %150 = arith.truncf %148 : vector<8x16xf32> to vector<8x16xbf16>
    %cst_41 = arith.constant dense<0.000000e+00> : vector<8x64xf32>
    %151 = tpu.matmul %150, %19, %cst_41 {dimension_numbers = #tpu.dot_dimension_numbers<[1], [0], [0], [1], [0, 0, 1, 1], [], []>} : vector<8x16xbf16>, vector<16x64xbf16>, vector<8x64xf32> -> vector<8x64xf32>
    %152 = arith.addf %149, %151 : vector<8x64xf32>
    %153 = math.tanh %152 : vector<8x64xf32>
    %154 = vector.extract_strided_slice %153 {offsets = [0, 0], sizes = [8, 48], strides = [1, 1]} : vector<8x64xf32> to vector<8x48xf32>
    %cst_42 = arith.constant 5.000000e-01 : f32
    %155 = vector.broadcast %cst_42 : f32 to vector<8x48xf32>
    %156 = arith.mulf %155, %154 : vector<8x48xf32>
    %cst_43 = arith.constant 5.000000e-01 : f32
    %157 = vector.broadcast %cst_43 : f32 to vector<8x48xf32>
    %158 = arith.addf %156, %157 : vector<8x48xf32>
    %159 = vector.extract_strided_slice %158 {offsets = [0, 0], sizes = [8, 16], strides = [1, 1]} : vector<8x48xf32> to vector<8x16xf32>
    %160 = vector.extract_strided_slice %158 {offsets = [0, 16], sizes = [8, 16], strides = [1, 1]} : vector<8x48xf32> to vector<8x16xf32>
    %161 = vector.extract_strided_slice %158 {offsets = [0, 32], sizes = [8, 16], strides = [1, 1]} : vector<8x48xf32> to vector<8x16xf32>
    %162 = vector.extract_strided_slice %153 {offsets = [0, 48], sizes = [8, 16], strides = [1, 1]} : vector<8x64xf32> to vector<8x16xf32>
    %163 = arith.mulf %160, %146 : vector<8x16xf32>
    %164 = arith.mulf %159, %162 : vector<8x16xf32>
    %165 = arith.addf %163, %164 : vector<8x16xf32>
    %166 = math.tanh %165 : vector<8x16xf32>
    %167 = arith.mulf %161, %166 : vector<8x16xf32>
    %c56 = arith.constant 56 : index
    %c0_44 = arith.constant 0 : index
    %168 = vector.load %arg8[%c56, %c0_44] : memref<64x64xf32, #tpu.memory_space<vmem>>, vector<8x64xf32>
    %169 = arith.truncf %167 : vector<8x16xf32> to vector<8x16xbf16>
    %cst_45 = arith.constant dense<0.000000e+00> : vector<8x64xf32>
    %170 = tpu.matmul %169, %19, %cst_45 {dimension_numbers = #tpu.dot_dimension_numbers<[1], [0], [0], [1], [0, 0, 1, 1], [], []>} : vector<8x16xbf16>, vector<16x64xbf16>, vector<8x64xf32> -> vector<8x64xf32>
    %171 = arith.addf %168, %170 : vector<8x64xf32>
    %172 = math.tanh %171 : vector<8x64xf32>
    %173 = vector.extract_strided_slice %172 {offsets = [0, 0], sizes = [8, 48], strides = [1, 1]} : vector<8x64xf32> to vector<8x48xf32>
    %cst_46 = arith.constant 5.000000e-01 : f32
    %174 = vector.broadcast %cst_46 : f32 to vector<8x48xf32>
    %175 = arith.mulf %174, %173 : vector<8x48xf32>
    %cst_47 = arith.constant 5.000000e-01 : f32
    %176 = vector.broadcast %cst_47 : f32 to vector<8x48xf32>
    %177 = arith.addf %175, %176 : vector<8x48xf32>
    %178 = vector.extract_strided_slice %177 {offsets = [0, 0], sizes = [8, 16], strides = [1, 1]} : vector<8x48xf32> to vector<8x16xf32>
    %179 = vector.extract_strided_slice %177 {offsets = [0, 16], sizes = [8, 16], strides = [1, 1]} : vector<8x48xf32> to vector<8x16xf32>
    %180 = vector.extract_strided_slice %177 {offsets = [0, 32], sizes = [8, 16], strides = [1, 1]} : vector<8x48xf32> to vector<8x16xf32>
    %181 = vector.extract_strided_slice %172 {offsets = [0, 48], sizes = [8, 16], strides = [1, 1]} : vector<8x64xf32> to vector<8x16xf32>
    %182 = arith.mulf %179, %165 : vector<8x16xf32>
    %183 = arith.mulf %178, %181 : vector<8x16xf32>
    %184 = arith.addf %182, %183 : vector<8x16xf32>
    %185 = math.tanh %184 : vector<8x16xf32>
    %186 = arith.mulf %180, %185 : vector<8x16xf32>
    %187 = vector.broadcast %24 : vector<1x16xf32> to vector<8x16xf32>
    %188 = arith.mulf %186, %187 : vector<8x16xf32>
    %cst_48 = arith.constant dense<0.000000e+00> : vector<8xf32>
    %189 = vector.multi_reduction <add>, %188, %cst_48 [1] : vector<8x16xf32> to vector<8xf32>
    %190 = vector.shape_cast %189 : vector<8xf32> to vector<8x1xf32>
    %c0_49 = arith.constant 0 : index
    %c0_50 = arith.constant 0 : index
    %191 = vector.load %arg6[%c0_49, %c0_50] : memref<1x1xf32, #tpu.memory_space<vmem>>, vector<1x1xf32>
    %192 = vector.broadcast %191 : vector<1x1xf32> to vector<8x1xf32>
    %193 = arith.addf %190, %192 : vector<8x1xf32>
    %c0_51 = arith.constant 0 : index
    %c0_52 = arith.constant 0 : index
    %194 = vector.load %arg7[%c0_51, %c0_52] : memref<8x1xf32, #tpu.memory_space<vmem>>, vector<8x1xf32>
    tpu.vector_store %arg7[%c0_51, %c0_52], %193 {strides = array<i32>} : memref<8x1xf32, #tpu.memory_space<vmem>>, vector<8x1xf32>,
    return
  }
}

</mosaic_0001>

<bundles_post_ra>
// kernel: tpu_custom_call.1
= control target key start
LH: loop header
LB: loop body
LE: loop exit
PB: predicated region body
PF: predicated region fallthrough
CT: control target
= control target key end

     0   :  { %s1074_s0 = inlined_call_operand.vmem [shape: f32[3], index: 0, kind: input, shape index: {}]   ;;  %s1075_s1 = inlined_call_operand.vmem [shape: f32[64,1], index: 1, kind: input, shape index: {}]   ;;  %s1076_s2 = inlined_call_operand.vmem [shape: s8[1,64], index: 2, kind: input, shape index: {}]   ;;  %s1077_s3 = inlined_call_operand.vmem [shape: s8[16,64], index: 3, kind: input, shape index: {}]   ;;  %s1078_s4 = inlined_call_operand.vmem [shape: f32[1,64], index: 4, kind: input, shape index: {}]   ;;  %s1079_s5 = inlined_call_operand.vmem [shape: s8[1,16], index: 5, kind: input, shape index: {}]   ;;  %s1080_s6 = inlined_call_operand.<no memory space> [shape: f32[1,1], index: 6, kind: input, shape index: {}]   ;;  %s1081_s7 = inlined_call_operand.vmem [shape: f32[8,1], index: 7, kind: output, shape index: {}]  }
   0x1   :  { %v12_v0 = vstv %s1080_s6 }
   0x2   :  { %13 = vst [vmem:[#allocation3] sm:$0x1] %v12_v0 }
   0x3   :  { %14 = vsyncpa [#allocation5], 0  ;;  %s21_s28 = sshll.u32 %s1074_s0, 4  ;;  %s22_s28 = int_to_ptr.vmem [resolvable:$true] %s21_s28 }
   0x4   :  { %s857_s29 = scalar_lea.vmem %s22_s28, 16  ;;  %p862_p1 = scmp.lt.s32.totalorder %s22_s28, %s22_s28 }
   0x5   :  { %p858_p0 = scmp.ne.s32.totalorder %s22_s28, %s857_s29  ;;  %p863_p2 = scmp.lt.s32.totalorder %s857_s29, %s857_s29 }
   0x7   :  { %p864_p3 = por %p863_p2, %p862_p1 }
   0x9   :  { %p865_p4 = pnand %p864_p3, %p858_p0 }
   0xb   :  { %868 = shalt.err (!%p865_p4)
}
   0xc   :  { %s871_s30 = smov [#allocation4]  }
   0xd   :  { %24 = dma.vmem_to_smem %s22_s28, 16, %s871_s30, [#allocation5]  }
   0xe   :  { %869 = dma.done.wait [#allocation5], 16  }
   0xf   :  { %870 = vsyncadd [#allocation5], 4294967280 }
  0x10   :  { %40 = sfence }
  0x11   :  { %v42_v1 = vlaneseq  ;;  %v747_v2 = vld [vmem:[%s1077_s3] sm:$0xf]   ;;  %s735_s9 = sld [smem:[#allocation4 + $0x1]]  ;;  %v872_v3 = vmov 0.0   ;;  %vm873_vm0 = vmmov 0   ;;  %v874_v8 = vmov 0  }
  0x12   :  { %766 = vmatprep.subr.bf16.mxu0 %v872_v3  ;;  %v748_v4 = vunpack.c.0.s8 %v747_v2  ;;  %v749_v5 = vunpack.c.1.s8 %v747_v2  ;;  %v71_v6 = vld [vmem:[%s1075_s1] sm:$0xff]  ;;  %772 = vmatprep.subr.bf16.mxu1 %v872_v3  ;;  %v875_v9 = vmov 1.0   ;;  %s49_s3 = sld [smem:[#allocation4]]  ;;  %vm146_vm2 = vcmask 523264   ;;  %v72_v46 = vld [vmem:[%s1075_s1 + $0x8] sm:$0xff]  ;;  %s878_s17 = smov 96  }
  0x13   :  { %v43_v7 = vand.u32 127, %v42_v1  ;;  %768 = vmatprep.mubr.msk.bf16.mxu0 %vm873_vm0, %v872_v3  ;;  %823 = vset.pattern.permute.xlu0 %v874_v8  ;;  %v46_v18 = vld [vmem:[%s1076_s2] sm:$0x1]  ;;  %v951_v23 = vshrl.u32 %v42_v1, 7  ;;  %s876_s2 = smov 80   ;;  %vm156_vm3 = vcmask 130048  }
  0x14   :  { %81 = vperm.xlu0 %823, %v71_v6   ;;  %774 = vmatprep.mubr.msk.bf16.mxu1 %vm873_vm0, %v872_v3  ;;  %v57_v11 = vcvt.s32.f32 %v748_v4  ;;  %v58_v12 = vcvt.s32.f32 %v749_v5  ;;  %v47_v19 = vunpack.c.0.s8 %v46_v18  ;;  %v961_v27 = vld [vmem:[%s1078_s4] ss:$0 sm:$0xff]  ;;  %s877_s4 = smov 16   ;;  %v73_v6 = vld [vmem:[%s1075_s1 + $0x10] sm:$0xff]  ;;  %s879_s8 = smov 32   ;;  %vm728_vm4 = vcmask 7168  }
  0x15   :  { %vm44_vm1 = vcmp.lt.s32.totalorder %v43_v7, 48  ;;  %824 = vset.pattern.permute.xlu1 %v874_v8  ;;  %v121_v25 = vsub.s32 0, %v951_v23  ;;  %v745_v23 = vld [vmem:[#allocation3] ss:$0 sm:$0xff] }
  0x16   :  { %v45_v10 = vsel %vm44_vm1, 0.5, %v875_v9  ;;  %v48_v21 = vcvt.s32.f32 %v47_v19 }
  0x17   :  { %v60_v13 = vstv %s735_s9 }
  0x18   :  { %v61_v14 = vmul.f32 %v60_v13, %v45_v10  ;;  %v50_v20 = vstv %s49_s3 }
  0x19   :  { %v51_v22 = vmul.f32 %v50_v20, %v45_v10 }
  0x1a   :  { %v62_v15 = vmul.f32 %v61_v14, %v57_v11  ;;  %v63_v16 = vmul.f32 %v61_v14, %v58_v12 }
  0x1b   :  { %v52_v24 = vmul.f32 %v51_v22, %v48_v21 }
  0x1c   :  { %v938_v17 = vpack.c.bf16 %v63_v16, %v62_v15 }
  0x1d   :  { %v956_v26 = vrot.slane %v52_v24, %v121_v25 }
  0x1e   :  { %767 = vmatpush3.bf16.msra.mxu0 %v938_v17  ;;  %773 = vmatpush3.bf16.msra.mxu1 %v938_v17 }
  0x1f   :  { %778 = vmatprep.subr.bf16.mxu0 %v872_v3  ;;  %784 = vmatprep.subr.bf16.mxu1 %v872_v3 }
  0x21   :  { %769 = vmatmul.mubr.bf16.vlgmr.msra.gmra.mrb[0].mxu0 %v874_v8 }
  0x22   :  { %779 = vmatpush3.bf16.msra.mxu0 %v938_v17  ;;  %780 = vmatprep.mubr.msk.bf16.mxu0 %vm873_vm0, %v872_v3 }
  0x23   :  { %790 = vmatprep.subr.bf16.mxu0 %v872_v3 }
  0x93   :  { %v82_v28 = vpop.permute.xlu0 %81 }
  0x94   :  { %v123_v29 = vmul.f32 %v956_v26, %v82_v28 }
  0x96   :  { %v138_v30 = vadd.f32 %v961_v27, %v123_v29 }
  0x98   :  { %147 = vst.msk [vmem:[#allocation2] sm:$0xff] %vm146_vm2, %v138_v30 }
  0x9f   :  { %v155_v31 = vld [vmem:[#allocation2] sm:$0xff] }
  0xf4   :  { %v194_v32 = vpop.f32.mrb[0].mxu0 }
  0xf5   :  { %v200_v33 = vadd.f32 %v194_v32, %v155_v31  ;;  %v770_v34 = vpop.f32.mrb[1].mxu0 }
  0xf6   :  { %v197_v35 = vpop.f32.mrb[2].mxu0  ;;  %v74_v34 = vld [vmem:[%s1075_s1 + $0x18] sm:$0xff] }
  0xf7   :  { %825 = vtanh.f32 %v200_v33  ;;  %v771_v36 = vpop.f32.mrb[3].mxu0 }
 0x101   :  { %v826_v37 = vpop.eup %825 }
 0x102   :  { %206 = vrot.lane.b32.xlu0 %v826_v37, %s876_s2  ;;  %v202_v38 = vmul.f32 0.5, %v826_v37 }
 0x104   :  { %v203_v39 = vadd.f32 0.5, %v202_v38 }
 0x106   :  { %v204_v42 = vmul.f32 0.0, %v203_v39 }
 0x174   :  { %v207_v40 = vpop.permute.xlu0 %206 }
 0x175   :  { %v209_v41 = vmul.f32 %v207_v40, %v203_v39 }
 0x177   :  { %211 = vrot.lane.b32.xlu1 %v209_v41, %s877_s4 }
 0x1e9   :  { %v212_v43 = vpop.permute.xlu1 %211 }
 0x1ea   :  { %v214_v44 = vadd.f32 %v212_v43, %v204_v42 }
 0x1ec   :  { %827 = vtanh.f32 %v214_v44 }
 0x1f6   :  { %v828_v45 = vpop.eup %827 }
 0x1f7   :  { %217 = vrot.lane.b32.xlu1 %v828_v45, %s877_s4 }
 0x1fb   :  { %86 = vperm.xlu1 %824, %v72_v46  }
 0x269   :  { %v218_v47 = vpop.permute.xlu1 %217 }
 0x26a   :  { %v220_v48 = vmul.f32 %v218_v47, %v203_v39 }
 0x26c   :  { %v222_v49 = vpack.c.bf16 %v220_v48, %v220_v48 }
 0x26e   :  { %224 = vrot.lane.b32.xlu0 %v222_v49, %s878_s17 }
 0x27a   :  { %v87_v51 = vpop.permute.xlu1 %86 }
 0x27b   :  { %v124_v52 = vmul.f32 %v956_v26, %v87_v51 }
 0x27d   :  { %v139_v53 = vadd.f32 %v961_v27, %v124_v52 }
 0x27f   :  { %148 = vst.msk [vmem:[#allocation2 + $0x8] sm:$0xff] %vm146_vm2, %v139_v53 }
 0x286   :  { %v221_v54 = vld [vmem:[#allocation2 + $0x8] sm:$0xff] }
 0x2e0   :  { %v225_v50 = vpop.permute.xlu0 %224 }
 0x2e1   :  { %775 = vmatmul.mubr.msk.bf16.vlgmr.msra.gmra.mrb[0].mxu1 %vm156_vm3, %v225_v50 }
 0x2e2   :  { %785 = vmatpush3.bf16.msra.mxu1 %v938_v17  ;;  %786 = vmatprep.mubr.msk.bf16.mxu1 %vm873_vm0, %v872_v3 }
 0x2e3   :  { %796 = vmatprep.subr.bf16.mxu1 %v872_v3 }
 0x3b4   :  { %v263_v55 = vpop.f32.mrb[0].mxu1 }
 0x3b5   :  { %v269_v56 = vadd.f32 %v263_v55, %v221_v54  ;;  %v776_v57 = vpop.f32.mrb[1].mxu1 }
 0x3b6   :  { %v266_v58 = vpop.f32.mrb[2].mxu1  ;;  %v75_v57 = vld [vmem:[%s1075_s1 + $0x20] sm:$0xff] }
 0x3b7   :  { %829 = vtanh.f32 %v269_v56  ;;  %v777_v59 = vpop.f32.mrb[3].mxu1 }
 0x3c1   :  { %v830_v60 = vpop.eup %829 }
 0x3c2   :  { %275 = vrot.lane.b32.xlu0 %v830_v60, %s876_s2  ;;  %v271_v61 = vmul.f32 0.5, %v830_v60 }
 0x3c4   :  { %v272_v62 = vadd.f32 0.5, %v271_v61 }
 0x3c6   :  { %v273_v1 = vmul.f32 %v272_v62, %v214_v44 }
 0x434   :  { %v276_v63 = vpop.permute.xlu0 %275 }
 0x435   :  { %v278_v0 = vmul.f32 %v276_v63, %v272_v62 }
 0x437   :  { %280 = vrot.lane.b32.xlu1 %v278_v0, %s877_s4 }
 0x4a9   :  { %v281_v2 = vpop.permute.xlu1 %280 }
 0x4aa   :  { %v283_v4 = vadd.f32 %v281_v2, %v273_v1 }
 0x4ac   :  { %831 = vtanh.f32 %v283_v4 }
 0x4b6   :  { %v832_v5 = vpop.eup %831 }
 0x4b7   :  { %286 = vrot.lane.b32.xlu0 %v832_v5, %s877_s4 }
 0x4bb   :  { %91 = vperm.xlu0 %823, %v73_v6  }
 0x529   :  { %v287_v7 = vpop.permute.xlu0 %286 }
 0x52a   :  { %v289_v8 = vmul.f32 %v287_v7, %v272_v62 }
 0x52c   :  { %v291_v9 = vpack.c.bf16 %v289_v8, %v289_v8 }
 0x52e   :  { %293 = vrot.lane.b32.xlu1 %v291_v9, %s878_s17 }
 0x53a   :  { %v92_v10 = vpop.permute.xlu0 %91 }
 0x53b   :  { %v125_v11 = vmul.f32 %v956_v26, %v92_v10 }
 0x53d   :  { %v140_v12 = vadd.f32 %v961_v27, %v125_v11 }
 0x53f   :  { %149 = vst.msk [vmem:[#allocation2 + $0x10] sm:$0xff] %vm146_vm2, %v140_v12 }
 0x546   :  { %v290_v14 = vld [vmem:[#allocation2 + $0x10] sm:$0xff] }
 0x5a0   :  { %v294_v13 = vpop.permute.xlu1 %293 }
 0x5a1   :  { %781 = vmatmul.mubr.msk.bf16.vlgmr.msra.gmra.mrb[4].mxu0 %vm156_vm3, %v294_v13 }
 0x5a2   :  { %791 = vmatpush3.bf16.msra.mxu0 %v938_v17  ;;  %792 = vmatprep.mubr.msk.bf16.mxu0 %vm873_vm0, %v872_v3 }
 0x5a3   :  { %802 = vmatprep.subr.bf16.mxu0 %v872_v3 }
 0x674   :  { %v332_v15 = vpop.f32.mrb[4].mxu0 }
 0x675   :  { %v338_v16 = vadd.f32 %v332_v15, %v290_v14  ;;  %v782_v18 = vpop.f32.mrb[5].mxu0 }
 0x676   :  { %v335_v19 = vpop.f32.mrb[6].mxu0  ;;  %v76_v18 = vld [vmem:[%s1075_s1 + $0x28] sm:$0xff] }
 0x677   :  { %833 = vtanh.f32 %v338_v16  ;;  %v783_v20 = vpop.f32.mrb[7].mxu0 }
 0x681   :  { %v834_v21 = vpop.eup %833 }
 0x682   :  { %344 = vrot.lane.b32.xlu1 %v834_v21, %s876_s2  ;;  %v340_v22 = vmul.f32 0.5, %v834_v21 }
 0x684   :  { %v341_v24 = vadd.f32 0.5, %v340_v22 }
 0x686   :  { %v342_v30 = vmul.f32 %v341_v24, %v283_v4 }
 0x6f4   :  { %v345_v28 = vpop.permute.xlu1 %344 }
 0x6f5   :  { %v347_v29 = vmul.f32 %v345_v28, %v341_v24 }
 0x6f7   :  { %349 = vrot.lane.b32.xlu0 %v347_v29, %s877_s4 }
 0x769   :  { %v350_v31 = vpop.permute.xlu0 %349 }
 0x76a   :  { %v352_v32 = vadd.f32 %v350_v31, %v342_v30 }
 0x76c   :  { %835 = vtanh.f32 %v352_v32 }
 0x776   :  { %v836_v33 = vpop.eup %835 }
 0x777   :  { %355 = vrot.lane.b32.xlu1 %v836_v33, %s877_s4 }
 0x77b   :  { %96 = vperm.xlu1 %824, %v74_v34  }
 0x7e9   :  { %v356_v35 = vpop.permute.xlu1 %355 }
 0x7ea   :  { %v358_v36 = vmul.f32 %v356_v35, %v341_v24 }
 0x7ec   :  { %v360_v37 = vpack.c.bf16 %v358_v36, %v358_v36 }
 0x7ee   :  { %362 = vrot.lane.b32.xlu0 %v360_v37, %s878_s17 }
 0x7fa   :  { %v97_v38 = vpop.permute.xlu1 %96 }
 0x7fb   :  { %v126_v39 = vmul.f32 %v956_v26, %v97_v38 }
 0x7fd   :  { %v141_v40 = vadd.f32 %v961_v27, %v126_v39 }
 0x7ff   :  { %150 = vst.msk [vmem:[#allocation2 + $0x18] sm:$0xff] %vm146_vm2, %v141_v40 }
 0x806   :  { %v359_v42 = vld [vmem:[#allocation2 + $0x18] sm:$0xff] }
 0x860   :  { %v363_v41 = vpop.permute.xlu0 %362 }
 0x861   :  { %787 = vmatmul.mubr.msk.bf16.vlgmr.msra.gmra.mrb[4].mxu1 %vm156_vm3, %v363_v41 }
 0x862   :  { %797 = vmatpush3.bf16.msra.mxu1 %v938_v17  ;;  %798 = vmatprep.mubr.msk.bf16.mxu1 %vm873_vm0, %v872_v3 }
 0x863   :  { %808 = vmatprep.subr.bf16.mxu1 %v872_v3 }
 0x934   :  { %v401_v43 = vpop.f32.mrb[4].mxu1 }
 0x935   :  { %v407_v44 = vadd.f32 %v401_v43, %v359_v42  ;;  %v788_v45 = vpop.f32.mrb[5].mxu1  ;;  %v77_v43 = vld [vmem:[%s1075_s1 + $0x30] sm:$0xff] }
 0x936   :  { %v404_v46 = vpop.f32.mrb[6].mxu1 }
 0x937   :  { %837 = vtanh.f32 %v407_v44  ;;  %v789_v47 = vpop.f32.mrb[7].mxu1 }
 0x941   :  { %v838_v48 = vpop.eup %837 }
 0x942   :  { %413 = vrot.lane.b32.xlu0 %v838_v48, %s876_s2  ;;  %v409_v49 = vmul.f32 0.5, %v838_v48 }
 0x944   :  { %v410_v50 = vadd.f32 0.5, %v409_v49 }
 0x946   :  { %v411_v53 = vmul.f32 %v410_v50, %v352_v32 }
 0x9b4   :  { %v414_v51 = vpop.permute.xlu0 %413 }
 0x9b5   :  { %v416_v52 = vmul.f32 %v414_v51, %v410_v50 }
 0x9b7   :  { %418 = vrot.lane.b32.xlu1 %v416_v52, %s877_s4 }
 0xa29   :  { %v419_v54 = vpop.permute.xlu1 %418 }
 0xa2a   :  { %v421_v55 = vadd.f32 %v419_v54, %v411_v53 }
 0xa2c   :  { %839 = vtanh.f32 %v421_v55 }
 0xa36   :  { %v840_v56 = vpop.eup %839 }
 0xa37   :  { %424 = vrot.lane.b32.xlu0 %v840_v56, %s877_s4 }
 0xa3b   :  { %101 = vperm.xlu0 %823, %v75_v57  }
 0xaa9   :  { %v425_v58 = vpop.permute.xlu0 %424 }
 0xaaa   :  { %v427_v59 = vmul.f32 %v425_v58, %v410_v50 }
 0xaac   :  { %v429_v60 = vpack.c.bf16 %v427_v59, %v427_v59 }
 0xaae   :  { %431 = vrot.lane.b32.xlu1 %v429_v60, %s878_s17 }
 0xaba   :  { %v102_v61 = vpop.permute.xlu0 %101 }
 0xabb   :  { %v127_v62 = vmul.f32 %v956_v26, %v102_v61 }
 0xabd   :  { %v142_v63 = vadd.f32 %v961_v27, %v127_v62 }
 0xabf   :  { %151 = vst.msk [vmem:[#allocation2 + $0x20] sm:$0xff] %vm146_vm2, %v142_v63 }
 0xac6   :  { %v428_v1 = vld [vmem:[#allocation2 + $0x20] sm:$0xff] }
 0xb20   :  { %v432_v0 = vpop.permute.xlu1 %431 }
 0xb21   :  { %793 = vmatmul.mubr.msk.bf16.vlgmr.msra.gmra.mrb[8].mxu0 %vm156_vm3, %v432_v0 }
 0xb22   :  { %803 = vmatpush3.bf16.msra.mxu0 %v938_v17  ;;  %804 = vmatprep.mubr.msk.bf16.mxu0 %vm873_vm0, %v872_v3 }
 0xbf4   :  { %v470_v2 = vpop.f32.mrb[8].mxu0 }
 0xbf5   :  { %v476_v4 = vadd.f32 %v470_v2, %v428_v1  ;;  %v794_v5 = vpop.f32.mrb[9].mxu0  ;;  %v78_v2 = vld [vmem:[%s1075_s1 + $0x38] sm:$0xff]  ;;  %s736_s1 = sld [smem:[#allocation4 + $0x2]] }
 0xbf6   :  { %v473_v6 = vpop.f32.mrb[10].mxu0 }
 0xbf7   :  { %841 = vtanh.f32 %v476_v4  ;;  %v795_v7 = vpop.f32.mrb[11].mxu0 }
 0xc01   :  { %v842_v8 = vpop.eup %841 }
 0xc02   :  { %482 = vrot.lane.b32.xlu1 %v842_v8, %s876_s2  ;;  %v478_v9 = vmul.f32 0.5, %v842_v8 }
 0xc04   :  { %v479_v10 = vadd.f32 0.5, %v478_v9 }
 0xc06   :  { %v480_v13 = vmul.f32 %v479_v10, %v421_v55 }
 0xc74   :  { %v483_v11 = vpop.permute.xlu1 %482 }
 0xc75   :  { %v485_v12 = vmul.f32 %v483_v11, %v479_v10 }
 0xc77   :  { %487 = vrot.lane.b32.xlu0 %v485_v12, %s877_s4 }
 0xce9   :  { %v488_v14 = vpop.permute.xlu0 %487 }
 0xcea   :  { %v490_v15 = vadd.f32 %v488_v14, %v480_v13 }
 0xcec   :  { %843 = vtanh.f32 %v490_v15 }
 0xcf6   :  { %v844_v16 = vpop.eup %843 }
 0xcf7   :  { %493 = vrot.lane.b32.xlu1 %v844_v16, %s877_s4 }
 0xcfb   :  { %106 = vperm.xlu1 %824, %v76_v18  }
 0xd69   :  { %v494_v19 = vpop.permute.xlu1 %493 }
 0xd6a   :  { %v496_v20 = vmul.f32 %v494_v19, %v479_v10 }
 0xd6c   :  { %v498_v21 = vpack.c.bf16 %v496_v20, %v496_v20 }
 0xd6e   :  { %500 = vrot.lane.b32.xlu0 %v498_v21, %s878_s17 }
 0xd7a   :  { %v107_v22 = vpop.permute.xlu1 %106 }
 0xd7b   :  { %v128_v24 = vmul.f32 %v956_v26, %v107_v22 }
 0xd7d   :  { %v143_v28 = vadd.f32 %v961_v27, %v128_v24  ;;  %v69_v24 = vstv %s736_s1 }
 0xd7f   :  { %152 = vst.msk [vmem:[#allocation2 + $0x28] sm:$0xff] %vm146_vm2, %v143_v28 }
 0xd86   :  { %v497_v30 = vld [vmem:[#allocation2 + $0x28] sm:$0xff] }
 0xde0   :  { %v501_v29 = vpop.permute.xlu0 %500 }
 0xde1   :  { %799 = vmatmul.mubr.msk.bf16.vlgmr.msra.gmra.mrb[8].mxu1 %vm156_vm3, %v501_v29 }
 0xde2   :  { %809 = vmatpush3.bf16.msra.mxu1 %v938_v17  ;;  %810 = vmatprep.mubr.msk.bf16.mxu1 %vm873_vm0, %v872_v3 }
 0xeb4   :  { %v539_v31 = vpop.f32.mrb[8].mxu1 }
 0xeb5   :  { %v545_v32 = vadd.f32 %v539_v31, %v497_v30  ;;  %v800_v33 = vpop.f32.mrb[9].mxu1 }
 0xeb6   :  { %v542_v34 = vpop.f32.mrb[10].mxu1 }
 0xeb7   :  { %845 = vtanh.f32 %v545_v32  ;;  %v801_v35 = vpop.f32.mrb[11].mxu1 }
 0xec1   :  { %v846_v36 = vpop.eup %845 }
 0xec2   :  { %551 = vrot.lane.b32.xlu0 %v846_v36, %s876_s2  ;;  %v547_v37 = vmul.f32 0.5, %v846_v36 }
 0xec4   :  { %v548_v38 = vadd.f32 0.5, %v547_v37 }
 0xec6   :  { %v549_v17 = vmul.f32 %v548_v38, %v490_v15 }
 0xf34   :  { %v552_v39 = vpop.permute.xlu0 %551 }
 0xf35   :  { %v554_v40 = vmul.f32 %v552_v39, %v548_v38 }
 0xf37   :  { %556 = vrot.lane.b32.xlu1 %v554_v40, %s877_s4 }
 0xfa9   :  { %v557_v41 = vpop.permute.xlu1 %556 }
 0xfaa   :  { %v559_v42 = vadd.f32 %v557_v41, %v549_v17 }
 0xfac   :  { %847 = vtanh.f32 %v559_v42 }
 0xfb6   :  { %v848_v3 = vpop.eup %847 }
 0xfb7   :  { %562 = vrot.lane.b32.xlu0 %v848_v3, %s877_s4 }
 0xfbb   :  { %111 = vperm.xlu0 %823, %v77_v43  }
0x1029   :  { %v563_v44 = vpop.permute.xlu0 %562 }
0x102a   :  { %v565_v45 = vmul.f32 %v563_v44, %v548_v38 }
0x102c   :  { %v567_v46 = vpack.c.bf16 %v565_v45, %v565_v45 }
0x102e   :  { %569 = vrot.lane.b32.xlu1 %v567_v46, %s878_s17 }
0x103a   :  { %v112_v47 = vpop.permute.xlu0 %111 }
0x103b   :  { %v129_v48 = vmul.f32 %v956_v26, %v112_v47 }
0x103d   :  { %v144_v49 = vadd.f32 %v961_v27, %v129_v48 }
0x103f   :  { %153 = vst.msk [vmem:[#allocation2 + $0x30] sm:$0xff] %vm146_vm2, %v144_v49 }
0x1046   :  { %v566_v51 = vld [vmem:[#allocation2 + $0x30] sm:$0xff] }
0x10a0   :  { %v570_v50 = vpop.permute.xlu1 %569 }
0x10a1   :  { %805 = vmatmul.mubr.msk.bf16.vlgmr.msra.gmra.mrb[12].mxu0 %vm156_vm3, %v570_v50 }
0x1174   :  { %v608_v52 = vpop.f32.mrb[12].mxu0 }
0x1175   :  { %v614_v53 = vadd.f32 %v608_v52, %v566_v51  ;;  %v806_v54 = vpop.f32.mrb[13].mxu0 }
0x1176   :  { %v611_v55 = vpop.f32.mrb[14].mxu0 }
0x1177   :  { %849 = vtanh.f32 %v614_v53  ;;  %v807_v56 = vpop.f32.mrb[15].mxu0 }
0x1181   :  { %v850_v57 = vpop.eup %849 }
0x1182   :  { %620 = vrot.lane.b32.xlu1 %v850_v57, %s876_s2  ;;  %v616_v58 = vmul.f32 0.5, %v850_v57 }
0x1184   :  { %v617_v59 = vadd.f32 0.5, %v616_v58 }
0x1186   :  { %v618_v62 = vmul.f32 %v617_v59, %v559_v42 }
0x11f4   :  { %v621_v60 = vpop.permute.xlu1 %620 }
0x11f5   :  { %v623_v61 = vmul.f32 %v621_v60, %v617_v59 }
0x11f7   :  { %625 = vrot.lane.b32.xlu0 %v623_v61, %s877_s4 }
0x1269   :  { %v626_v63 = vpop.permute.xlu0 %625 }
0x126a   :  { %v628_v0 = vadd.f32 %v626_v63, %v618_v62 }
0x126c   :  { %851 = vtanh.f32 %v628_v0 }
0x1276   :  { %v852_v1 = vpop.eup %851 }
0x1277   :  { %631 = vrot.lane.b32.xlu1 %v852_v1, %s877_s4 }
0x127b   :  { %116 = vperm.xlu1 %824, %v78_v2  }
0x12e9   :  { %v632_v4 = vpop.permute.xlu1 %631 }
0x12ea   :  { %v634_v5 = vmul.f32 %v632_v4, %v617_v59 }
0x12ec   :  { %v636_v6 = vpack.c.bf16 %v634_v5, %v634_v5 }
0x12ee   :  { %638 = vrot.lane.b32.xlu0 %v636_v6, %s878_s17 }
0x12fa   :  { %v117_v7 = vpop.permute.xlu1 %116 }
0x12fb   :  { %v130_v8 = vmul.f32 %v956_v26, %v117_v7  ;;  %v65_v26 = vld [vmem:[%s1079_s5] sm:$0x1] }
0x12fd   :  { %v145_v9 = vadd.f32 %v961_v27, %v130_v8  ;;  %v66_v27 = vunpack.c.0.s8 %v65_v26 }
0x12ff   :  { %154 = vst.msk [vmem:[#allocation2 + $0x38] sm:$0xff] %vm146_vm2, %v145_v9  ;;  %v67_v21 = vcvt.s32.f32 %v66_v27 }
0x1301   :  { %v70_v29 = vmul.f32 %v69_v24, %v67_v21 }
0x1303   :  { %v707_v30 = vrot.slane %v70_v29, %v121_v25 }
0x1306   :  { %v635_v11 = vld [vmem:[#allocation2 + $0x38] sm:$0xff] }
0x1360   :  { %v639_v10 = vpop.permute.xlu0 %638 }
0x1361   :  { %811 = vmatmul.mubr.msk.bf16.vlgmr.msra.gmra.mrb[12].mxu1 %vm156_vm3, %v639_v10 }
0x1434   :  { %v677_v12 = vpop.f32.mrb[12].mxu1 }
0x1435   :  { %v683_v13 = vadd.f32 %v677_v12, %v635_v11  ;;  %v812_v14 = vpop.f32.mrb[13].mxu1 }
0x1436   :  { %v680_v15 = vpop.f32.mrb[14].mxu1 }
0x1437   :  { %853 = vtanh.f32 %v683_v13  ;;  %v813_v16 = vpop.f32.mrb[15].mxu1 }
0x1441   :  { %v854_v18 = vpop.eup %853 }
0x1442   :  { %689 = vrot.lane.b32.xlu0 %v854_v18, %s876_s2  ;;  %v685_v19 = vmul.f32 0.5, %v854_v18 }
0x1444   :  { %v686_v20 = vadd.f32 0.5, %v685_v19 }
0x1446   :  { %v687_v31 = vmul.f32 %v686_v20, %v628_v0 }
0x14b4   :  { %v690_v22 = vpop.permute.xlu0 %689 }
0x14b5   :  { %v692_v28 = vmul.f32 %v690_v22, %v686_v20 }
0x14b7   :  { %694 = vrot.lane.b32.xlu1 %v692_v28, %s877_s4 }
0x14bb   :  { %709 = vrot.lane.b32.xlu1 %v707_v30, %s879_s8 }
0x1529   :  { %v695_v32 = vpop.permute.xlu1 %694 }
0x152a   :  { %v697_v33 = vadd.f32 %v695_v32, %v687_v31 }
0x152c   :  { %855 = vtanh.f32 %v697_v33 }
0x152d   :  { %v710_v36 = vpop.permute.xlu1 %709 }
0x1536   :  { %v856_v34 = vpop.eup %855 }
0x1537   :  { %700 = vrot.lane.b32.xlu0 %v856_v34, %s877_s4 }
0x15a9   :  { %v701_v35 = vpop.permute.xlu0 %700 }
0x15aa   :  { %v703_v37 = vmul.f32 %v701_v35, %v686_v20 }
0x15ac   :  { %v712_v38 = vmul.f32 %v710_v36, %v703_v37 }
0x15ae   :  { %714 = vrot.lane.b32.xlu0 %v712_v38, %s878_s17 }
0x1620   :  { %v715_v39 = vpop.permute.xlu0 %714 }
0x1621   :  { %v717_v40 = vsel %vm156_vm3, %v715_v39, 0.0 }
0x1622   :  { %718 = vadd.xlane.f32.xlu1 %v717_v40 }
0x16af   :  { %v719_v25 = vpop.xlane.xlu1 %718 }
0x16b0   :  { %v727_v17 = vadd.f32 %v745_v23, %v719_v25 }
0x16b2   :  { %729 = vst.msk [vmem:[%s1081_s7] sm:$0xff] %vm728_vm4, %v727_v17 }
0x16b3   :  { %734 = vsyncpa [#allocation5], 1 }

</bundles_post_ra>
